<compile_context>
chip_gen: v7x
topology: tpu7x:2x2x1
jax: 0.10.0
libtpu: 0.0.40
codegen_flags: <defaults>
</compile_context>

<pallas_src>
import functools

import jax
import jax.numpy as jnp
from jax.experimental import pallas as pl
from jax.experimental.pallas import tpu as pltpu


_D_IN, _H1, _H2, _H2_PAD, _D_OUT = 512, 256, 120, 128, 3

# Single-buffer the VMEM-resident weights/biases (constant index_map => never
# re-DMA'd after the first step).  Guarded so older jax still runs.
_RESIDENT = (
    dict(pipeline_mode=pl.Buffered(buffer_count=1))
    if hasattr(pl, "Buffered") else {}
)


def _mlp_kernel(x_ref, w1_ref, b1_ref, w2_ref, b2_ref, w3_ref, b3_ref, o_ref,
                *, compute_dtype):
    """One batch tile: three matmuls + bias + ReLU, all on-chip.

    compute_dtype controls the MXU input dtype (f32 or bf16); accumulation,
    bias add and ReLU are always f32.
    """
    x = x_ref[...].astype(compute_dtype)                              # (TB, 512)
    h1 = jnp.dot(x, w1_ref[...], preferred_element_type=jnp.float32)
    h1 = jnp.maximum(h1 + b1_ref[...], 0.0)                           # (TB, 256) f32
    h2 = jnp.dot(h1.astype(compute_dtype), w2_ref[...],
                 preferred_element_type=jnp.float32)
    h2 = jnp.maximum(h2 + b2_ref[...], 0.0)                           # (TB, 128) f32
    h3 = jnp.dot(h2.astype(compute_dtype), w3_ref[...],
                 preferred_element_type=jnp.float32)
    o_ref[...] = jnp.maximum(h3 + b3_ref[...], 0.0)                   # (TB, 3)


def _round_up(n, m):
    return ((n + m - 1) // m) * m


def _prepare_params(params, compute_dtype):
    """Pad hidden dim 120 -> 128 (exact) and cast weights to the MXU dtype."""
    w1 = params["w1"].astype(compute_dtype)
    b1 = params["b1"].astype(jnp.float32)
    w2 = jnp.pad(params["w2"], ((0, 0), (0, _H2_PAD - _H2))).astype(compute_dtype)
    b2 = jnp.pad(params["b2"], ((0, 0), (0, _H2_PAD - _H2))).astype(jnp.float32)
    w3 = jnp.pad(params["w3"], ((0, _H2_PAD - _H2), (0, 0))).astype(compute_dtype)
    b3 = params["b3"].astype(jnp.float32)
    return w1, b1, w2, b2, w3, b3


@functools.partial(jax.jit, static_argnames=("block_b", "use_bf16"))
def fc_part_forward(x, params, *, block_b=1024, use_bf16=True):
    """x: (B, 512) float32.  params: dict of w1,b1,w2,b2,w3,b3 (x@W layout).

    use_bf16=True (default): bf16 MXU inputs, f32 accumulation (fast path).
    use_bf16=False: bit-exact f32 path matching the PyTorch module.
    """
    B = x.shape[0]
    compute_dtype = jnp.bfloat16 if use_bf16 else jnp.float32
    w1, b1, w2, b2, w3, b3 = _prepare_params(params, compute_dtype)

    # Batch tile: multiple of the f32 sublane (8).  Megacore-aware: once
    # B > 8 the grid has >= 2 steps so the "parallel" batch axis can be
    # sharded over both v7x TensorCores.  No wrapper-side padding of x —
    # the final partial block is handled by Pallas masked stores.
    block_b = _round_up(max(int(block_b), 8), 8)
    tb = min(block_b, _round_up(max(-(-B // 2), 1), 8))
    grid = (pl.cdiv(B, tb),)

    flops = 2 * B * (_D_IN * _H1 + _H1 * _H2_PAD + _H2_PAD * _D_OUT)
    bytes_accessed = (
        x.size * x.dtype.itemsize
        + sum(a.size * a.dtype.itemsize for a in (w1, b1, w2, b2, w3, b3))
        + B * _D_OUT * 4
    )

    out = pl.pallas_call(
        functools.partial(_mlp_kernel, compute_dtype=compute_dtype),
        out_shape=jax.ShapeDtypeStruct((B, _D_OUT), jnp.float32),
        grid=grid,
        in_specs=[
            # x: streamed per batch tile (double-buffered DMA overlapped
            # with compute); stays f32 in HBM even on the bf16 path.
            pl.BlockSpec((tb, _D_IN), lambda i: (i, 0)),
            # weights / biases: constant index_map -> VMEM-resident across
            # grid steps, single-buffered.
            pl.BlockSpec((_D_IN, _H1), lambda i: (0, 0), **_RESIDENT),
            pl.BlockSpec((1, _H1), lambda i: (0, 0), **_RESIDENT),
            pl.BlockSpec((_H1, _H2_PAD), lambda i: (0, 0), **_RESIDENT),
            pl.BlockSpec((1, _H2_PAD), lambda i: (0, 0), **_RESIDENT),
            pl.BlockSpec((_H2_PAD, _D_OUT), lambda i: (0, 0), **_RESIDENT),
            pl.BlockSpec((1, _D_OUT), lambda i: (0, 0), **_RESIDENT),
        ],
        out_specs=pl.BlockSpec((tb, _D_OUT), lambda i: (i, 0)),
        compiler_params=pltpu.CompilerParams(
            dimension_semantics=("parallel",),   # megacore sharding on v7x
            vmem_limit_bytes=32 * 1024 * 1024,   # generation-safe incl. v7x
        ),
        cost_estimate=pl.CostEstimate(
            flops=flops, transcendentals=0, bytes_accessed=bytes_accessed),
    )(x, w1, b1, w2, b2, w3, b3)

    return out


def init_params(key):
    """Deterministic init mimicking PyTorch nn.Linear default
    (U(-1/sqrt(fan_in), 1/sqrt(fan_in))).  Weights stored as (in, out)."""
    dims = [(_D_IN, _H1), (_H1, _H2), (_H2, _D_OUT)]
    params = {}
    keys = jax.random.split(key, 2 * len(dims))
    for i, (fan_in, fan_out) in enumerate(dims):
        bound = 1.0 / jnp.sqrt(float(fan_in))
        params[f"w{i + 1}"] = jax.random.uniform(
            keys[2 * i], (fan_in, fan_out),
            minval=-bound, maxval=bound, dtype=jnp.float32)
        params[f"b{i + 1}"] = jax.random.uniform(
            keys[2 * i + 1], (1, fan_out),
            minval=-bound, maxval=bound, dtype=jnp.float32)
    return params


def _reference(x, params):
    h = jnp.maximum(x @ params["w1"] + params["b1"], 0.0)
    h = jnp.maximum(h @ params["w2"] + params["b2"], 0.0)
    return jnp.maximum(h @ params["w3"] + params["b3"], 0.0)


if __name__ == "__main__":
    key = jax.random.PRNGKey(0)
    k_x, k_x2, k_p = jax.random.split(key, 3)

    params = init_params(k_p)

    # Small deterministic input consistent with the module: (batch, 512).
    B = 8
    x = jax.random.normal(k_x, (B, _D_IN), dtype=jnp.float32)
    ref = _reference(x, params)

    # Bit-exact f32 path.
    out_f32 = jax.block_until_ready(fc_part_forward(x, params, use_bf16=False))
    assert out_f32.shape == (B, _D_OUT), out_f32.shape
    assert jnp.allclose(out_f32, ref, atol=1e-5, rtol=1e-5), "f32 mismatch"

    # Default fast path: bf16 MXU inputs, f32 accumulation — looser tolerance.
    out_bf16 = jax.block_until_ready(fc_part_forward(x, params))
    assert out_bf16.shape == (B, _D_OUT), out_bf16.shape
    assert jnp.allclose(out_bf16, ref, atol=5e-2, rtol=5e-2), "bf16 mismatch"

    # Ragged batch: partial final block, no wrapper-side padding of x.
    B2 = 5
    x2 = jax.random.normal(k_x2, (B2, _D_IN), dtype=jnp.float32)
    out2 = jax.block_until_ready(fc_part_forward(x2, params, use_bf16=False))
    ref2 = _reference(x2, params)
    assert out2.shape == (B2, _D_OUT), out2.shape
    assert jnp.allclose(out2, ref2, atol=1e-5, rtol=1e-5), "ragged-B mismatch"

    # Multi-step grid (megacore-aware split + partial last tile).
    B3 = 24
    x3 = jax.random.normal(k_x, (B3, _D_IN), dtype=jnp.float32)
    out3 = jax.block_until_ready(fc_part_forward(x3, params, use_bf16=False))
    ref3 = _reference(x3, params)
    assert out3.shape == (B3, _D_OUT), out3.shape
    assert jnp.allclose(out3, ref3, atol=1e-5, rtol=1e-5), "multi-tile mismatch"

    print("KERNEL_OK")
</pallas_src>

<mosaic_0001>
module attributes {stable_mosaic.version = 11 : i64} {
  func.func @_mlp_kernel(%arg0: i32, %arg1: memref<8x512xf32, #tpu.memory_space<vmem>>, %arg2: memref<512x256xf32, #tpu.memory_space<vmem>>, %arg3: memref<1x256xf32, #tpu.memory_space<vmem>>, %arg4: memref<256x128xf32, #tpu.memory_space<vmem>>, %arg5: memref<1x128xf32, #tpu.memory_space<vmem>>, %arg6: memref<128x3xf32, #tpu.memory_space<vmem>>, %arg7: memref<1x3xf32, #tpu.memory_space<vmem>>, %arg8: memref<8x3xf32, #tpu.memory_space<vmem>>) attributes {dimension_semantics = [#tpu.dimension_semantics<parallel>], iteration_bounds = array<i64: 1>, scalar_prefetch = 0 : i64, scratch_operands = 0 : i64, tpu.core_type = #tpu.core_type<tc>, window_params = [{transform_indices = @transform_0, window_bounds = array<i64: 8, 512>}, {pipeline_mode = #tpu.pipeline_mode<synchronous>, transform_indices = @transform_1, window_bounds = array<i64: 512, 256>}, {pipeline_mode = #tpu.pipeline_mode<synchronous>, transform_indices = @transform_2, window_bounds = array<i64: 1, 256>}, {pipeline_mode = #tpu.pipeline_mode<synchronous>, transform_indices = @transform_3, window_bounds = array<i64: 256, 128>}, {pipeline_mode = #tpu.pipeline_mode<synchronous>, transform_indices = @transform_4, window_bounds = array<i64: 1, 128>}, {pipeline_mode = #tpu.pipeline_mode<synchronous>, transform_indices = @transform_5, window_bounds = array<i64: 128, 3>}, {pipeline_mode = #tpu.pipeline_mode<synchronous>, transform_indices = @transform_6, window_bounds = array<i64: 1, 3>}, {transform_indices = @transform_7, window_bounds = array<i64: 8, 3>}]} {
    %c0 = arith.constant 0 : index
    %c0_0 = arith.constant 0 : index
    %0 = vector.load %arg1[%c0, %c0_0] : memref<8x512xf32, #tpu.memory_space<vmem>>, vector<8x512xf32>
    %c0_1 = arith.constant 0 : index
    %c0_2 = arith.constant 0 : index
    %1 = vector.load %arg2[%c0_1, %c0_2] : memref<512x256xf32, #tpu.memory_space<vmem>>, vector<512x256xf32>
    %cst = arith.constant dense<0.000000e+00> : vector<8x256xf32>
    %2 = tpu.matmul %0, %1, %cst {dimension_numbers = #tpu.dot_dimension_numbers<[1], [0], [0], [1], [0, 0, 1, 1], [], []>} : vector<8x512xf32>, vector<512x256xf32>, vector<8x256xf32> -> vector<8x256xf32>
    %c0_3 = arith.constant 0 : index
    %c0_4 = arith.constant 0 : index
    %3 = vector.load %arg3[%c0_3, %c0_4] : memref<1x256xf32, #tpu.memory_space<vmem>>, vector<1x256xf32>
    %4 = vector.broadcast %3 : vector<1x256xf32> to vector<8x256xf32>
    %5 = arith.addf %2, %4 : vector<8x256xf32>
    %cst_5 = arith.constant 0.000000e+00 : f32
    %6 = vector.broadcast %cst_5 : f32 to vector<8x256xf32>
    %7 = arith.maximumf %5, %6 : vector<8x256xf32>
    %c0_6 = arith.constant 0 : index
    %c0_7 = arith.constant 0 : index
    %8 = vector.load %arg4[%c0_6, %c0_7] : memref<256x128xf32, #tpu.memory_space<vmem>>, vector<256x128xf32>
    %cst_8 = arith.constant dense<0.000000e+00> : vector<8x128xf32>
    %9 = tpu.matmul %7, %8, %cst_8 {dimension_numbers = #tpu.dot_dimension_numbers<[1], [0], [0], [1], [0, 0, 1, 1], [], []>} : vector<8x256xf32>, vector<256x128xf32>, vector<8x128xf32> -> vector<8x128xf32>
    %c0_9 = arith.constant 0 : index
    %c0_10 = arith.constant 0 : index
    %10 = vector.load %arg5[%c0_9, %c0_10] : memref<1x128xf32, #tpu.memory_space<vmem>>, vector<1x128xf32>
    %11 = vector.broadcast %10 : vector<1x128xf32> to vector<8x128xf32>
    %12 = arith.addf %9, %11 : vector<8x128xf32>
    %cst_11 = arith.constant 0.000000e+00 : f32
    %13 = vector.broadcast %cst_11 : f32 to vector<8x128xf32>
    %14 = arith.maximumf %12, %13 : vector<8x128xf32>
    %c0_12 = arith.constant 0 : index
    %c0_13 = arith.constant 0 : index
    %15 = vector.load %arg6[%c0_12, %c0_13] : memref<128x3xf32, #tpu.memory_space<vmem>>, vector<128x3xf32>
    %cst_14 = arith.constant dense<0.000000e+00> : vector<8x3xf32>
    %16 = tpu.matmul %14, %15, %cst_14 {dimension_numbers = #tpu.dot_dimension_numbers<[1], [0], [0], [1], [0, 0, 1, 1], [], []>} : vector<8x128xf32>, vector<128x3xf32>, vector<8x3xf32> -> vector<8x3xf32>
    %c0_15 = arith.constant 0 : index
    %c0_16 = arith.constant 0 : index
    %17 = vector.load %arg7[%c0_15, %c0_16] : memref<1x3xf32, #tpu.memory_space<vmem>>, vector<1x3xf32>
    %18 = vector.broadcast %17 : vector<1x3xf32> to vector<8x3xf32>
    %19 = arith.addf %16, %18 : vector<8x3xf32>
    %cst_17 = arith.constant 0.000000e+00 : f32
    %20 = vector.broadcast %cst_17 : f32 to vector<8x3xf32>
    %21 = arith.maximumf %19, %20 : vector<8x3xf32>
    %c0_18 = arith.constant 0 : index
    %c0_19 = arith.constant 0 : index
    %22 = vector.load %arg8[%c0_18, %c0_19] : memref<8x3xf32, #tpu.memory_space<vmem>>, vector<8x3xf32>
    tpu.vector_store %arg8[%c0_18, %c0_19], %21 {strides = array<i32>} : memref<8x3xf32, #tpu.memory_space<vmem>>, vector<8x3xf32>,
    return
  }
  func.func @transform_0(%arg0: i32) -> (i32, i32) {
    %c0_i32 = arith.constant 0 : i32
    %c0_i32_0 = arith.constant 0 : i32
    return %arg0, %c0_i32 : i32, i32
  }
  func.func @transform_1(%arg0: i32) -> (i32, i32) {
    %c0_i32 = arith.constant 0 : i32
    %c0_i32_0 = arith.constant 0 : i32
    %c0_i32_1 = arith.constant 0 : i32
    return %c0_i32, %c0_i32_0 : i32, i32
  }
  func.func @transform_2(%arg0: i32) -> (i32, i32) {
    %c0_i32 = arith.constant 0 : i32
    %c0_i32_0 = arith.constant 0 : i32
    %c0_i32_1 = arith.constant 0 : i32
    return %c0_i32, %c0_i32_0 : i32, i32
  }
  func.func @transform_3(%arg0: i32) -> (i32, i32) {
    %c0_i32 = arith.constant 0 : i32
    %c0_i32_0 = arith.constant 0 : i32
    %c0_i32_1 = arith.constant 0 : i32
    return %c0_i32, %c0_i32_0 : i32, i32
  }
  func.func @transform_4(%arg0: i32) -> (i32, i32) {
    %c0_i32 = arith.constant 0 : i32
    %c0_i32_0 = arith.constant 0 : i32
    %c0_i32_1 = arith.constant 0 : i32
    return %c0_i32, %c0_i32_0 : i32, i32
  }
  func.func @transform_5(%arg0: i32) -> (i32, i32) {
    %c0_i32 = arith.constant 0 : i32
    %c0_i32_0 = arith.constant 0 : i32
    %c0_i32_1 = arith.constant 0 : i32
    return %c0_i32, %c0_i32_0 : i32, i32
  }
  func.func @transform_6(%arg0: i32) -> (i32, i32) {
    %c0_i32 = arith.constant 0 : i32
    %c0_i32_0 = arith.constant 0 : i32
    %c0_i32_1 = arith.constant 0 : i32
    return %c0_i32, %c0_i32_0 : i32, i32
  }
  func.func @transform_7(%arg0: i32) -> (i32, i32) {
    %c0_i32 = arith.constant 0 : i32
    %c0_i32_0 = arith.constant 0 : i32
    return %arg0, %c0_i32 : i32, i32
  }
}

</mosaic_0001>

<bundles_post_ra>
// kernel: fc_part_forward.1
= control target key start
LH: loop header
LB: loop body
LE: loop exit
PB: predicated region body
PF: predicated region fallthrough
CT: control target
= control target key end

     0   :  { %vm805_vm0 = vmmov 0   ;;  %vm518_vm1 = vcmask 23552   ;;  %s1399_s1 = inlined_call_operand.vmem [shape: f32[512,256], index: 1, kind: input, shape index: {}]   ;;  %s1400_s0 = inlined_call_operand.vmem [shape: f32[8,512], index: 0, kind: input, shape index: {}]   ;;  %s1401_s3 = inlined_call_operand.vmem [shape: f32[256,128], index: 3, kind: input, shape index: {}]   ;;  %s1402_s2 = inlined_call_operand.vmem [shape: f32[1,256], index: 2, kind: input, shape index: {}]   ;;  %s1403_s5 = inlined_call_operand.vmem [shape: f32[128,3], index: 5, kind: input, shape index: {}]   ;;  %s1404_s4 = inlined_call_operand.vmem [shape: f32[1,128], index: 4, kind: input, shape index: {}]   ;;  %s1405_s6 = inlined_call_operand.vmem [shape: f32[1,3], index: 6, kind: input, shape index: {}]   ;;  %s1406_s7 = inlined_call_operand.vmem [shape: f32[8,3], index: 7, kind: output, shape index: {}]  }
   0x1   :  { %v31_v0 = vld [vmem:[%s1399_s1 + $0x8] sm:$0xff]  ;;  %v33_v1 = vld [vmem:[%s1399_s1 + $0x18] sm:$0xff]  ;;  %v30_v2 = vld [vmem:[%s1399_s1] sm:$0xff] }
   0x2   :  { %v613_v3 = vpack.c.bf16 %v33_v1, %v31_v0  ;;  %v32_v4 = vld [vmem:[%s1399_s1 + $0x10] sm:$0xff]  ;;  %v35_v5 = vld [vmem:[%s1399_s1 + $0x28] sm:$0xff]  ;;  %v37_v6 = vld [vmem:[%s1399_s1 + $0x38] sm:$0xff] }
   0x3   :  { %v615_v7 = vpack.c.bf16 %v32_v4, %v30_v2  ;;  %v617_v8 = vpack.c.bf16 %v37_v6, %v35_v5  ;;  %v34_v9 = vld [vmem:[%s1399_s1 + $0x20] sm:$0xff]  ;;  %v36_v10 = vld [vmem:[%s1399_s1 + $0x30] sm:$0xff]  ;;  %v39_v11 = vld [vmem:[%s1399_s1 + $0x48] sm:$0xff] }
   0x4   :  { %614 = vmatprep.subr.bf16.mxu0 %v613_v3  ;;  %v41_v12 = vld [vmem:[%s1399_s1 + $0x58] sm:$0xff]  ;;  %v619_v13 = vpack.c.bf16 %v36_v10, %v34_v9  ;;  %v38_v15 = vld [vmem:[%s1399_s1 + $0x40] sm:$0xff]  ;;  %v40_v16 = vld [vmem:[%s1399_s1 + $0x50] sm:$0xff] }
   0x5   :  { %616 = vmatpush1.bf16.msra.mxu0 %v615_v7  ;;  %v621_v14 = vpack.c.bf16 %v41_v12, %v39_v11  ;;  %v43_v17 = vld [vmem:[%s1399_s1 + $0x68] sm:$0xff]  ;;  %v45_v18 = vld [vmem:[%s1399_s1 + $0x78] sm:$0xff]  ;;  %v623_v19 = vpack.c.bf16 %v40_v16, %v38_v15  ;;  %v42_v21 = vld [vmem:[%s1399_s1 + $0x60] sm:$0xff] }
   0x6   :  { %618 = vmatprep.subr.bf16.mxu0 %v617_v8  ;;  %v625_v20 = vpack.c.bf16 %v45_v18, %v43_v17  ;;  %v44_v22 = vld [vmem:[%s1399_s1 + $0x70] sm:$0xff]  ;;  %v47_v23 = vld [vmem:[%s1399_s1 + $0x88] sm:$0xff]  ;;  %v49_v24 = vld [vmem:[%s1399_s1 + $0x98] sm:$0xff] }
   0x7   :  { %v627_v25 = vpack.c.bf16 %v44_v22, %v42_v21  ;;  %v629_v26 = vpack.c.bf16 %v49_v24, %v47_v23  ;;  %v46_v27 = vld [vmem:[%s1399_s1 + $0x80] sm:$0xff]  ;;  %v48_v28 = vld [vmem:[%s1399_s1 + $0x90] sm:$0xff]  ;;  %v51_v29 = vld [vmem:[%s1399_s1 + $0xa8] sm:$0xff] }
   0x8   :  { %v53_v30 = vld [vmem:[%s1399_s1 + $0xb8] sm:$0xff]  ;;  %v631_v31 = vpack.c.bf16 %v48_v28, %v46_v27  ;;  %v50_v33 = vld [vmem:[%s1399_s1 + $0xa0] sm:$0xff]  ;;  %v52_v34 = vld [vmem:[%s1399_s1 + $0xb0] sm:$0xff] }
   0x9   :  { %620 = vmatpush1.bf16.msra.mxu0 %v619_v13  ;;  %v633_v32 = vpack.c.bf16 %v53_v30, %v51_v29  ;;  %v55_v35 = vld [vmem:[%s1399_s1 + $0xc8] sm:$0xff]  ;;  %v57_v36 = vld [vmem:[%s1399_s1 + $0xd8] sm:$0xff]  ;;  %v635_v37 = vpack.c.bf16 %v52_v34, %v50_v33  ;;  %v54_v39 = vld [vmem:[%s1399_s1 + $0xc0] sm:$0xff] }
   0xa   :  { %622 = vmatprep.subr.bf16.mxu0 %v621_v14  ;;  %v637_v38 = vpack.c.bf16 %v57_v36, %v55_v35  ;;  %v56_v40 = vld [vmem:[%s1399_s1 + $0xd0] sm:$0xff]  ;;  %v27_v41 = vld [vmem:[%s1400_s0 + $0x8] sm:$0xff]  ;;  %v61_v43 = vld [vmem:[%s1399_s1 + $0xf8] sm:$0xff] }
   0xb   :  { %v59_v42 = vld [vmem:[%s1399_s1 + $0xe8] sm:$0xff]  ;;  %234 = vmatprep.mubr.f32.mxu0 %v27_v41  ;;  %v639_v44 = vpack.c.bf16 %v56_v40, %v54_v39  ;;  %v58_v46 = vld [vmem:[%s1399_s1 + $0xe0] sm:$0xff]  ;;  %v60_v47 = vld [vmem:[%s1399_s1 + $0xf0] sm:$0xff] }
   0xc   :  { %v641_v45 = vpack.c.bf16 %v61_v43, %v59_v42  ;;  %v63_v48 = vld [vmem:[%s1399_s1 + $0x108] sm:$0xff]  ;;  %v65_v49 = vld [vmem:[%s1399_s1 + $0x118] sm:$0xff]  ;;  %v643_v50 = vpack.c.bf16 %v60_v47, %v58_v46  ;;  %v62_v52 = vld [vmem:[%s1399_s1 + $0x100] sm:$0xff] }
   0xd   :  { %624 = vmatpush1.bf16.msra.mxu0 %v623_v19  ;;  %v645_v51 = vpack.c.bf16 %v65_v49, %v63_v48  ;;  %v64_v53 = vld [vmem:[%s1399_s1 + $0x110] sm:$0xff]  ;;  %v67_v54 = vld [vmem:[%s1399_s1 + $0x128] sm:$0xff]  ;;  %v69_v55 = vld [vmem:[%s1399_s1 + $0x138] sm:$0xff] }
   0xe   :  { %626 = vmatprep.subr.bf16.mxu0 %v625_v20  ;;  %v647_v56 = vpack.c.bf16 %v64_v53, %v62_v52  ;;  %v649_v57 = vpack.c.bf16 %v69_v55, %v67_v54  ;;  %v66_v58 = vld [vmem:[%s1399_s1 + $0x120] sm:$0xff]  ;;  %v68_v59 = vld [vmem:[%s1399_s1 + $0x130] sm:$0xff]  ;;  %v71_v60 = vld [vmem:[%s1399_s1 + $0x148] sm:$0xff] }
   0xf   :  { %v73_v61 = vld [vmem:[%s1399_s1 + $0x158] sm:$0xff]  ;;  %v651_v62 = vpack.c.bf16 %v68_v59, %v66_v58  ;;  %v70_v0 = vld [vmem:[%s1399_s1 + $0x140] sm:$0xff]  ;;  %v72_v1 = vld [vmem:[%s1399_s1 + $0x150] sm:$0xff] }
  0x10   :  { %v653_v63 = vpack.c.bf16 %v73_v61, %v71_v60  ;;  %v75_v2 = vld [vmem:[%s1399_s1 + $0x168] sm:$0xff]  ;;  %v77_v3 = vld [vmem:[%s1399_s1 + $0x178] sm:$0xff]  ;;  %v655_v4 = vpack.c.bf16 %v72_v1, %v70_v0  ;;  %v74_v6 = vld [vmem:[%s1399_s1 + $0x160] sm:$0xff] }
  0x11   :  { %628 = vmatpush1.bf16.msra.mxu0 %v627_v25  ;;  %v657_v5 = vpack.c.bf16 %v77_v3, %v75_v2  ;;  %v76_v7 = vld [vmem:[%s1399_s1 + $0x170] sm:$0xff]  ;;  %v79_v8 = vld [vmem:[%s1399_s1 + $0x188] sm:$0xff]  ;;  %v81_v9 = vld [vmem:[%s1399_s1 + $0x198] sm:$0xff] }
  0x12   :  { %630 = vmatprep.subr.bf16.mxu0 %v629_v26  ;;  %v78_v10 = vld [vmem:[%s1399_s1 + $0x180] sm:$0xff]  ;;  %v80_v11 = vld [vmem:[%s1399_s1 + $0x190] sm:$0xff]  ;;  %v659_v12 = vpack.c.bf16 %v76_v7, %v74_v6  ;;  %v83_v13 = vld [vmem:[%s1399_s1 + $0x1a8] sm:$0xff]  ;;  %v661_v18 = vpack.c.bf16 %v81_v9, %v79_v8 }
  0x13   :  { %v85_v14 = vld [vmem:[%s1399_s1 + $0x1b8] sm:$0xff]  ;;  %v330_v15 = vld [vmem:[%s1401_s3 + $0x80] sm:$0xff]  ;;  %v331_v16 = vld [vmem:[%s1401_s3 + $0x88] sm:$0xff]  ;;  %v663_v29 = vpack.c.bf16 %v80_v11, %v78_v10 }
  0x14   :  { %v314_v17 = vld [vmem:[%s1401_s3] sm:$0xff]  ;;  %v741_v19 = vpack.c.bf16 %v331_v16, %v330_v15  ;;  %v315_v20 = vld [vmem:[%s1401_s3 + $0x8] sm:$0xff]  ;;  %v332_v21 = vld [vmem:[%s1401_s3 + $0x90] sm:$0xff]  ;;  %v665_v33 = vpack.c.bf16 %v85_v14, %v83_v13 }
  0x15   :  { %632 = vmatpush1.bf16.msra.mxu0 %v631_v31  ;;  %v333_v22 = vld [vmem:[%s1401_s3 + $0x98] sm:$0xff]  ;;  %v743_v23 = vpack.c.bf16 %v315_v20, %v314_v17  ;;  %v316_v25 = vld [vmem:[%s1401_s3 + $0x10] sm:$0xff]  ;;  %v334_v27 = vld [vmem:[%s1401_s3 + $0xa0] sm:$0xff] }
  0x16   :  { %634 = vmatprep.subr.bf16.mxu0 %v633_v32  ;;  %v745_v24 = vpack.c.bf16 %v333_v22, %v332_v21  ;;  %v317_v26 = vld [vmem:[%s1401_s3 + $0x18] sm:$0xff]  ;;  %742 = vmatprep.subr.bf16.mxu1 %v741_v19  ;;  %v335_v28 = vld [vmem:[%s1401_s3 + $0xa8] sm:$0xff]  ;;  %v82_v30 = vld [vmem:[%s1399_s1 + $0x1a0] sm:$0xff] }
  0x17   :  { %v84_v31 = vld [vmem:[%s1399_s1 + $0x1b0] sm:$0xff]  ;;  %744 = vmatpush3.bf16.msra.mxu1 %v743_v23  ;;  %v747_v32 = vpack.c.bf16 %v317_v26, %v316_v25  ;;  %v87_v34 = vld [vmem:[%s1399_s1 + $0x1c8] sm:$0xff]  ;;  %v749_v35 = vpack.c.bf16 %v335_v28, %v334_v27  ;;  %v318_v36 = vld [vmem:[%s1401_s3 + $0x20] sm:$0xff] }
  0x18   :  { %746 = vmatprep.subr.bf16.mxu1 %v745_v24  ;;  %v336_v39 = vld [vmem:[%s1401_s3 + $0xb0] sm:$0xff]  ;;  %v337_v40 = vld [vmem:[%s1401_s3 + $0xb8] sm:$0xff]  ;;  %v667_v41 = vpack.c.bf16 %v84_v31, %v82_v30  ;;  %v86_v42 = vld [vmem:[%s1399_s1 + $0x1c0] sm:$0xff] }
  0x19   :  { %636 = vmatpush1.bf16.msra.mxu0 %v635_v37  ;;  %v319_v37 = vld [vmem:[%s1401_s3 + $0x28] sm:$0xff]  ;;  %v88_v43 = vld [vmem:[%s1399_s1 + $0x1d0] sm:$0xff]  ;;  %v753_v47 = vpack.c.bf16 %v337_v40, %v336_v39  ;;  %v321_v49 = vld [vmem:[%s1401_s3 + $0x38] sm:$0xff] }
  0x1a   :  { %638 = vmatprep.subr.bf16.mxu0 %v637_v38  ;;  %v89_v38 = vld [vmem:[%s1399_s1 + $0x1d8] sm:$0xff]  ;;  %v91_v46 = vld [vmem:[%s1399_s1 + $0x1e8] sm:$0xff]  ;;  %v320_v48 = vld [vmem:[%s1401_s3 + $0x30] sm:$0xff]  ;;  %v671_v53 = vpack.c.bf16 %v88_v43, %v86_v42 }
  0x1b   :  { %748 = vmatpush3.bf16.msra.mxu1 %v747_v32  ;;  %v339_v52 = vld [vmem:[%s1401_s3 + $0xc8] sm:$0xff]  ;;  %v90_v54 = vld [vmem:[%s1399_s1 + $0x1e0] sm:$0xff]  ;;  %v92_v55 = vld [vmem:[%s1399_s1 + $0x1f0] sm:$0xff] }
  0x1c   :  { %750 = vmatprep.subr.bf16.mxu1 %v749_v35  ;;  %v95_v58 = vld [vmem:[%s1399_s1 + $0x208] sm:$0xff]  ;;  %v322_v60 = vld [vmem:[%s1401_s3 + $0x40] sm:$0xff]  ;;  %v341_v0 = vld [vmem:[%s1401_s3 + $0xd8] sm:$0xff]  ;;  %v675_v1 = vpack.c.bf16 %v92_v55, %v90_v54 }
  0x1d   :  { %640 = vmatpush1.bf16.msra.mxu0 %v639_v44  ;;  %v751_v44 = vpack.c.bf16 %v319_v37, %v318_v36  ;;  %v323_v61 = vld [vmem:[%s1401_s3 + $0x48] sm:$0xff]  ;;  %v101_v8 = vld [vmem:[%s1399_s1 + $0x238] sm:$0xff]  ;;  %v324_v9 = vld [vmem:[%s1401_s3 + $0x50] sm:$0xff] }
  0x1e   :  { %642 = vmatprep.subr.bf16.mxu0 %v641_v45  ;;  %v669_v45 = vpack.c.bf16 %v89_v38, %v87_v34  ;;  %v759_v2 = vpack.c.bf16 %v323_v61, %v322_v60  ;;  %v99_v6 = vld [vmem:[%s1399_s1 + $0x228] sm:$0xff]  ;;  %v325_v10 = vld [vmem:[%s1401_s3 + $0x58] sm:$0xff]  ;;  %v342_v11 = vld [vmem:[%s1401_s3 + $0xe0] sm:$0xff] }
  0x1f   :  { %752 = vmatpush3.bf16.msra.mxu1 %v751_v44  ;;  %v26_v13 = vld [vmem:[%s1400_s0] sm:$0xff]  ;;  %v681_v15 = vpack.c.bf16 %v101_v8, %v99_v6  ;;  %v100_v17 = vld [vmem:[%s1399_s1 + $0x230] sm:$0xff]  ;;  %v763_v19 = vpack.c.bf16 %v325_v10, %v324_v9  ;;  %v103_v20 = vld [vmem:[%s1399_s1 + $0x248] sm:$0xff] }
  0x20   :  { %754 = vmatprep.subr.bf16.mxu1 %v753_v47  ;;  %v98_v16 = vld [vmem:[%s1399_s1 + $0x220] sm:$0xff]  ;;  %v105_v21 = vld [vmem:[%s1399_s1 + $0x258] sm:$0xff]  ;;  %v104_v26 = vld [vmem:[%s1399_s1 + $0x250] sm:$0xff] }
  0x21   :  { %644 = vmatpush1.bf16.msra.mxu0 %v643_v50  ;;  %v93_v50 = vld [vmem:[%s1399_s1 + $0x1f8] sm:$0xff]  ;;  %v683_v23 = vpack.c.bf16 %v100_v17, %v98_v16  ;;  %v685_v24 = vpack.c.bf16 %v105_v21, %v103_v20  ;;  %v102_v25 = vld [vmem:[%s1399_s1 + $0x240] sm:$0xff]  ;;  %v107_v27 = vld [vmem:[%s1399_s1 + $0x268] sm:$0xff] }
  0x22   :  { %646 = vmatprep.subr.bf16.mxu0 %v645_v51  ;;  %v338_v51 = vld [vmem:[%s1401_s3 + $0xc0] sm:$0xff]  ;;  %v109_v28 = vld [vmem:[%s1399_s1 + $0x278] sm:$0xff]  ;;  %v108_v32 = vld [vmem:[%s1399_s1 + $0x270] sm:$0xff] }
  0x23   :  { %v757_v59 = vpack.c.bf16 %v339_v52, %v338_v51  ;;  %v689_v30 = vpack.c.bf16 %v109_v28, %v107_v27  ;;  %v106_v31 = vld [vmem:[%s1399_s1 + $0x260] sm:$0xff]  ;;  %v113_v34 = vld [vmem:[%s1399_s1 + $0x298] sm:$0xff]  ;;  %v112_v38 = vld [vmem:[%s1399_s1 + $0x290] sm:$0xff] }
  0x24   :  { %v691_v35 = vpack.c.bf16 %v108_v32, %v106_v31  ;;  %v110_v37 = vld [vmem:[%s1399_s1 + $0x280] sm:$0xff]  ;;  %v115_v39 = vld [vmem:[%s1399_s1 + $0x2a8] sm:$0xff]  ;;  %v117_v40 = vld [vmem:[%s1399_s1 + $0x2b8] sm:$0xff] }
  0x25   :  { %648 = vmatpush1.bf16.msra.mxu0 %v647_v56  ;;  %v755_v56 = vpack.c.bf16 %v321_v49, %v320_v48  ;;  %v697_v42 = vpack.c.bf16 %v117_v40, %v115_v39  ;;  %v114_v43 = vld [vmem:[%s1399_s1 + $0x2a0] sm:$0xff]  ;;  %v116_v44 = vld [vmem:[%s1399_s1 + $0x2b0] sm:$0xff]  ;;  %v123_v51 = vld [vmem:[%s1399_s1 + $0x2e8] sm:$0xff] }
  0x26   :  { %650 = vmatprep.subr.bf16.mxu0 %v649_v57  ;;  %v673_v57 = vpack.c.bf16 %v93_v50, %v91_v46  ;;  %v121_v46 = vld [vmem:[%s1399_s1 + $0x2d8] sm:$0xff]  ;;  %v699_v47 = vpack.c.bf16 %v116_v44, %v114_v43  ;;  %v118_v49 = vld [vmem:[%s1399_s1 + $0x2c0] sm:$0xff]  ;;  %v120_v50 = vld [vmem:[%s1399_s1 + $0x2d0] sm:$0xff] }
  0x27   :  { %756 = vmatpush3.bf16.msra.mxu1 %v755_v56  ;;  %v125_v52 = vld [vmem:[%s1399_s1 + $0x2f8] sm:$0xff]  ;;  %v122_v55 = vld [vmem:[%s1399_s1 + $0x2e0] sm:$0xff]  ;;  %v124_v56 = vld [vmem:[%s1399_s1 + $0x2f0] sm:$0xff] }
  0x28   :  { %758 = vmatprep.subr.bf16.mxu1 %v757_v59  ;;  %v705_v54 = vpack.c.bf16 %v125_v52, %v123_v51  ;;  %v707_v59 = vpack.c.bf16 %v124_v56, %v122_v55  ;;  %v126_v61 = vld [vmem:[%s1399_s1 + $0x300] sm:$0xff]  ;;  %v137_v6 = vld [vmem:[%s1399_s1 + $0x358] sm:$0xff]  ;;  %v136_v10 = vld [vmem:[%s1399_s1 + $0x350] sm:$0xff]  ;;  %v804_v52 = vmov 0.0|0.0  }
  0x29   :  { %652 = vmatpush1.bf16.msra.mxu0 %v651_v62  ;;  %v97_v62 = vld [vmem:[%s1399_s1 + $0x218] sm:$0xff]  ;;  %v134_v9 = vld [vmem:[%s1399_s1 + $0x340] sm:$0xff]  ;;  %v140_v16 = vld [vmem:[%s1399_s1 + $0x370] sm:$0xff] }
  0x2a   :  { %654 = vmatprep.subr.bf16.mxu0 %v653_v63  ;;  %v340_v63 = vld [vmem:[%s1401_s3 + $0xd0] sm:$0xff]  ;;  %v677_v3 = vpack.c.bf16 %v97_v62, %v95_v58  ;;  %v129_v58 = vld [vmem:[%s1399_s1 + $0x318] sm:$0xff]  ;;  %v143_v17 = vld [vmem:[%s1399_s1 + $0x388] sm:$0xff] }
  0x2b   :  { %v761_v7 = vpack.c.bf16 %v341_v0, %v340_v63  ;;  %760 = vmatpush3.bf16.msra.mxu1 %v759_v2  ;;  %v128_v62 = vld [vmem:[%s1399_s1 + $0x310] sm:$0xff]  ;;  %v131_v63 = vld [vmem:[%s1399_s1 + $0x328] sm:$0xff]  ;;  %v133_v0 = vld [vmem:[%s1399_s1 + $0x338] sm:$0xff] }
  0x2c   :  { %v713_v2 = vpack.c.bf16 %v133_v0, %v131_v63  ;;  %v142_v21 = vld [vmem:[%s1399_s1 + $0x380] sm:$0xff]  ;;  %v148_v28 = vld [vmem:[%s1399_s1 + $0x3b0] sm:$0xff]  ;;  %v327_v44 = vld [vmem:[%s1401_s3 + $0x68] sm:$0xff] }
  0x2d   :  { %656 = vmatpush1.bf16.msra.mxu0 %v655_v4  ;;  %v94_v4 = vld [vmem:[%s1399_s1 + $0x200] sm:$0xff]  ;;  %762 = vmatprep.subr.bf16.mxu1 %v761_v7  ;;  %v156_v40 = vld [vmem:[%s1399_s1 + $0x3f0] sm:$0xff]  ;;  %v425_v0 = vld [vmem:[%s1403_s5 + $0x8] sm:$0xff] }
  0x2e   :  { %658 = vmatprep.subr.bf16.mxu0 %v657_v5  ;;  %v96_v5 = vld [vmem:[%s1399_s1 + $0x210] sm:$0xff]  ;;  %v146_v27 = vld [vmem:[%s1399_s1 + $0x3a0] sm:$0xff] }
  0x2f   :  { %v679_v14 = vpack.c.bf16 %v96_v5, %v94_v4  ;;  %764 = vmatpush3.bf16.msra.mxu1 %v763_v19  ;;  %v132_v4 = vld [vmem:[%s1399_s1 + $0x330] sm:$0xff]  ;;  %v135_v5 = vld [vmem:[%s1399_s1 + $0x348] sm:$0xff]  ;;  %v731_v31 = vpack.c.bf16 %v148_v28, %v146_v27  ;;  %v154_v39 = vld [vmem:[%s1399_s1 + $0x3e0] sm:$0xff] }
  0x30   :  { %v717_v8 = vpack.c.bf16 %v137_v6, %v135_v5  ;;  %v326_v43 = vld [vmem:[%s1401_s3 + $0x60] sm:$0xff]  ;;  %v426_v5 = vld [vmem:[%s1403_s5 + $0x10] sm:$0xff]  ;;  %v427_v6 = vld [vmem:[%s1403_s5 + $0x18] sm:$0xff] }
  0x31   :  { %660 = vmatpush1.bf16.msra.mxu0 %v659_v12  ;;  %v343_v12 = vld [vmem:[%s1401_s3 + $0xe8] sm:$0xff]  ;;  %v158_v56 = vld [vmem:[%s1402_s2] sm:$0x3] }
  0x32   :  { %662 = vmatprep.subr.bf16.mxu0 %v661_v18  ;;  %v29_v18 = vld [vmem:[%s1400_s0 + $0x18] sm:$0xff]  ;;  %v765_v22 = vpack.c.bf16 %v343_v12, %v342_v11  ;;  %v139_v11 = vld [vmem:[%s1399_s1 + $0x368] sm:$0xff]  ;;  %v424_v63 = vld [vmem:[%s1403_s5] sm:$0xff] }
  0x33   :  { %v141_v12 = vld [vmem:[%s1399_s1 + $0x378] sm:$0xff]  ;;  %v524_v28 = vld [vmem:[%s1404_s4] ss:$0 sm:$0xff] }
  0x34   :  { %766 = vmatprep.subr.bf16.mxu1 %v765_v22  ;;  %v144_v22 = vld [vmem:[%s1399_s1 + $0x390] sm:$0xff] }
  0x35   :  { %664 = vmatpush1.bf16.msra.mxu0 %v663_v29  ;;  %v687_v29 = vpack.c.bf16 %v104_v26, %v102_v25  ;;  %v727_v25 = vpack.c.bf16 %v144_v22, %v142_v21  ;;  %v437_v21 = vld [vmem:[%s1403_s5 + $0x68] sm:$0xff] }
  0x36   :  { %666 = vmatprep.subr.bf16.mxu0 %v665_v33  ;;  %v111_v33 = vld [vmem:[%s1399_s1 + $0x288] sm:$0xff] }
  0x37   :  { %v693_v36 = vpack.c.bf16 %v113_v34, %v111_v33  ;;  %v150_v33 = vld [vmem:[%s1399_s1 + $0x3c0] sm:$0xff]  ;;  %v152_v34 = vld [vmem:[%s1399_s1 + $0x3d0] sm:$0xff] }
  0x39   :  { %668 = vmatpush1.bf16.msra.mxu0 %v667_v41  ;;  %v695_v41 = vpack.c.bf16 %v112_v38, %v110_v37  ;;  %v735_v37 = vpack.c.bf16 %v152_v34, %v150_v33  ;;  %v525_v33 = vld [vmem:[%s1405_s6] ss:$0 sm:$0xff] }
  0x3a   :  { %670 = vmatprep.subr.bf16.mxu0 %v669_v45  ;;  %v119_v45 = vld [vmem:[%s1399_s1 + $0x2c8] sm:$0xff] }
  0x3b   :  { %v701_v48 = vpack.c.bf16 %v121_v46, %v119_v45  ;;  %v767_v45 = vpack.c.bf16 %v327_v44, %v326_v43  ;;  %v344_v46 = vld [vmem:[%s1401_s3 + $0xf0] sm:$0xff] }
  0x3d   :  { %672 = vmatpush1.bf16.msra.mxu0 %v671_v53  ;;  %v703_v53 = vpack.c.bf16 %v120_v50, %v118_v49  ;;  %768 = vmatpush3.bf16.msra.mxu1 %v767_v45  ;;  %v328_v49 = vld [vmem:[%s1401_s3 + $0x70] sm:$0xff]  ;;  %v329_v50 = vld [vmem:[%s1401_s3 + $0x78] sm:$0xff] }
  0x3e   :  { %674 = vmatprep.subr.bf16.mxu0 %v673_v57  ;;  %v127_v57 = vld [vmem:[%s1399_s1 + $0x308] sm:$0xff]  ;;  %v771_v51 = vpack.c.bf16 %v329_v50, %v328_v49 }
  0x3f   :  { %v709_v60 = vpack.c.bf16 %v129_v58, %v127_v57 }
  0x41   :  { %676 = vmatpush1.bf16.msra.mxu0 %v675_v1  ;;  %v711_v1 = vpack.c.bf16 %v128_v62, %v126_v61 }
  0x42   :  { %678 = vmatprep.subr.bf16.mxu0 %v677_v3  ;;  %v130_v3 = vld [vmem:[%s1399_s1 + $0x320] sm:$0xff] }
  0x43   :  { %v715_v7 = vpack.c.bf16 %v132_v4, %v130_v3  ;;  %v774_v3 = vpack.c.bf16 %v425_v0, %v424_v63 }
  0x44   :  { %235 = vmatmul.mubr.f32.vlgmr.msra.gmra.mrb[0].mxu0 %v26_v13  ;;  %v719_v13 = vpack.c.bf16 %v136_v10, %v134_v9  ;;  %v429_v9 = vld [vmem:[%s1403_s5 + $0x28] sm:$0xff] }
  0x45   :  { %680 = vmatpush1.bf16.msra.mxu0 %v679_v14  ;;  %305 = vmatprep.mubr.f32.mxu0 %v29_v18  ;;  %v721_v14 = vpack.c.bf16 %v141_v12, %v139_v11  ;;  %v145_v18 = vld [vmem:[%s1399_s1 + $0x398] sm:$0xff]  ;;  %v430_v11 = vld [vmem:[%s1403_s5 + $0x30] sm:$0xff] }
  0x46   :  { %682 = vmatprep.subr.bf16.mxu0 %v681_v15  ;;  %v138_v15 = vld [vmem:[%s1399_s1 + $0x360] sm:$0xff]  ;;  %v725_v20 = vpack.c.bf16 %v145_v18, %v143_v17  ;;  %v431_v12 = vld [vmem:[%s1403_s5 + $0x38] sm:$0xff]  ;;  %v434_v17 = vld [vmem:[%s1403_s5 + $0x50] sm:$0xff] }
  0x47   :  { %v723_v19 = vpack.c.bf16 %v140_v16, %v138_v15  ;;  %v433_v15 = vld [vmem:[%s1403_s5 + $0x48] sm:$0xff]  ;;  %v435_v18 = vld [vmem:[%s1403_s5 + $0x58] sm:$0xff] }
  0x49   :  { %684 = vmatpush1.bf16.msra.mxu0 %v683_v23  ;;  %v147_v23 = vld [vmem:[%s1399_s1 + $0x3a8] sm:$0xff] }
  0x4a   :  { %686 = vmatprep.subr.bf16.mxu0 %v685_v24  ;;  %v149_v24 = vld [vmem:[%s1399_s1 + $0x3b8] sm:$0xff] }
  0x4b   :  { %v729_v26 = vpack.c.bf16 %v149_v24, %v147_v23  ;;  %v438_v23 = vld [vmem:[%s1403_s5 + $0x70] sm:$0xff]  ;;  %v439_v24 = vld [vmem:[%s1403_s5 + $0x78] sm:$0xff] }
  0x4d   :  { %688 = vmatpush1.bf16.msra.mxu0 %v687_v29  ;;  %v151_v29 = vld [vmem:[%s1399_s1 + $0x3c8] sm:$0xff] }
  0x4e   :  { %690 = vmatprep.subr.bf16.mxu0 %v689_v30  ;;  %v153_v30 = vld [vmem:[%s1399_s1 + $0x3d8] sm:$0xff] }
  0x4f   :  { %v733_v32 = vpack.c.bf16 %v153_v30, %v151_v29 }
  0x51   :  { %692 = vmatpush1.bf16.msra.mxu0 %v691_v35  ;;  %v155_v35 = vld [vmem:[%s1399_s1 + $0x3e8] sm:$0xff] }
  0x52   :  { %694 = vmatprep.subr.bf16.mxu0 %v693_v36  ;;  %v157_v36 = vld [vmem:[%s1399_s1 + $0x3f8] sm:$0xff] }
  0x53   :  { %v737_v38 = vpack.c.bf16 %v157_v36, %v155_v35 }
  0x55   :  { %696 = vmatpush1.bf16.msra.mxu0 %v695_v41  ;;  %v739_v41 = vpack.c.bf16 %v156_v40, %v154_v39 }
  0x56   :  { %698 = vmatprep.subr.bf16.mxu0 %v697_v42  ;;  %v28_v42 = vld [vmem:[%s1400_s0 + $0x10] sm:$0xff] }
  0x59   :  { %700 = vmatpush1.bf16.msra.mxu0 %v699_v47  ;;  %v345_v47 = vld [vmem:[%s1401_s3 + $0xf8] sm:$0xff] }
  0x5a   :  { %702 = vmatprep.subr.bf16.mxu0 %v701_v48  ;;  %v769_v48 = vpack.c.bf16 %v345_v47, %v344_v46 }
  0x5c   :  { %770 = vmatprep.subr.bf16.mxu1 %v769_v48 }
  0x5d   :  { %704 = vmatpush1.bf16.msra.mxu0 %v703_v53  ;;  %772 = vmatpush3.bf16.msra.mxu1 %v771_v51  ;;  %v160_v53 = vlaneseq }
  0x5e   :  { %706 = vmatprep.subr.bf16.mxu0 %v705_v54  ;;  %773 = vmatprep.subr.bf16.mxu1 %v804_v52 }
  0x5f   :  { %v161_v54 = vshrl.u32 %v160_v53, 7 }
  0x61   :  { %708 = vmatpush1.bf16.msra.mxu0 %v707_v59  ;;  %v162_v55 = vsub.s32 0, %v161_v54  ;;  %v166_v57 = vsub.s32 1, %v161_v54 }
  0x62   :  { %710 = vmatprep.subr.bf16.mxu0 %v709_v60 }
  0x63   :  { %v163_v58 = vrot.slane %v158_v56, %v162_v55  ;;  %v167_v59 = vrot.slane %v158_v56, %v166_v57 }
  0x65   :  { %712 = vmatpush1.bf16.msra.mxu0 %v711_v1 }
  0x66   :  { %714 = vmatprep.subr.bf16.mxu0 %v713_v2 }
  0x69   :  { %716 = vmatpush1.bf16.msra.mxu0 %v715_v7  ;;  %v777_v7 = vpack.c.bf16 %v427_v6, %v426_v5 }
  0x6a   :  { %718 = vmatprep.subr.bf16.mxu0 %v717_v8  ;;  %v428_v8 = vld [vmem:[%s1403_s5 + $0x20] sm:$0xff] }
  0x6b   :  { %v780_v10 = vpack.c.bf16 %v429_v9, %v428_v8 }
  0x6d   :  { %720 = vmatpush1.bf16.msra.mxu0 %v719_v13  ;;  %v783_v13 = vpack.c.bf16 %v431_v12, %v430_v11 }
  0x6e   :  { %722 = vmatprep.subr.bf16.mxu0 %v721_v14  ;;  %v432_v14 = vld [vmem:[%s1403_s5 + $0x40] sm:$0xff] }
  0x6f   :  { %v786_v16 = vpack.c.bf16 %v433_v15, %v432_v14 }
  0x71   :  { %724 = vmatpush1.bf16.msra.mxu0 %v723_v19  ;;  %v789_v19 = vpack.c.bf16 %v435_v18, %v434_v17 }
  0x72   :  { %726 = vmatprep.subr.bf16.mxu0 %v725_v20  ;;  %v436_v20 = vld [vmem:[%s1403_s5 + $0x60] sm:$0xff] }
  0x73   :  { %v792_v22 = vpack.c.bf16 %v437_v21, %v436_v20 }
  0x75   :  { %728 = vmatpush1.bf16.msra.mxu0 %v727_v25  ;;  %v795_v25 = vpack.c.bf16 %v439_v24, %v438_v23 }
  0x76   :  { %730 = vmatprep.subr.bf16.mxu0 %v729_v26  ;;  %v806_v26 = vmov 0.0  }
  0x79   :  { %732 = vmatpush1.bf16.msra.mxu0 %v731_v31 }
  0x7a   :  { %734 = vmatprep.subr.bf16.mxu0 %v733_v32 }
  0x7d   :  { %736 = vmatpush1.bf16.msra.mxu0 %v735_v37 }
  0x7e   :  { %738 = vmatprep.subr.bf16.mxu0 %v737_v38 }
  0x81   :  { %740 = vmatpush1.bf16.msra.mxu0 %v739_v41 }
  0x84   :  { %306 = vmatmul.mubr.f32.vlgmr.msra.gmra.mrb[0].mxu0 %v28_v42 }
 0x157   :  { %v307_v60 = vpop.f32.mrb[0].mxu0 }
 0x158   :  { %v797_v61 = vadd.f32 %v307_v60, %v163_v58  ;;  %v309_v62 = vpop.f32.mrb[1].mxu0 }
 0x159   :  { %v798_v1 = vadd.f32 %v309_v62, %v167_v59 }
 0x15a   :  { %v312_v4 = vmax.f32 %v797_v61, 0.0 }
 0x15b   :  { %v313_v2 = vmax.f32 %v798_v1, 0.0 }
 0x15d   :  { %417 = vmatprep.mubr.f32.mxu1 %v313_v2 }
 0x15e   :  { %418 = vmatmul.mubr.f32.vlgmr.msra.gmra.mrb[0].mxu1 %v312_v4 }
 0x15f   :  { %775 = vmatpush3.bf16.msra.mxu1 %v774_v3  ;;  %610 = vmatprep.mubr.msk.f32.mxu1 %vm805_vm0, %v806_v26 }
 0x160   :  { %776 = vmatprep.subr.bf16.mxu1 %v804_v52 }
 0x163   :  { %778 = vmatpush3.bf16.msra.mxu1 %v777_v7 }
 0x164   :  { %779 = vmatprep.subr.bf16.mxu1 %v804_v52 }
 0x167   :  { %781 = vmatpush3.bf16.msra.mxu1 %v780_v10 }
 0x168   :  { %782 = vmatprep.subr.bf16.mxu1 %v804_v52 }
 0x16b   :  { %784 = vmatpush3.bf16.msra.mxu1 %v783_v13 }
 0x16c   :  { %785 = vmatprep.subr.bf16.mxu1 %v804_v52 }
 0x16f   :  { %787 = vmatpush3.bf16.msra.mxu1 %v786_v16 }
 0x170   :  { %788 = vmatprep.subr.bf16.mxu1 %v804_v52 }
 0x173   :  { %790 = vmatpush3.bf16.msra.mxu1 %v789_v19 }
 0x174   :  { %791 = vmatprep.subr.bf16.mxu1 %v804_v52 }
 0x177   :  { %793 = vmatpush3.bf16.msra.mxu1 %v792_v22 }
 0x178   :  { %794 = vmatprep.subr.bf16.mxu1 %v804_v52 }
 0x17b   :  { %796 = vmatpush3.bf16.msra.mxu1 %v795_v25 }
 0x231   :  { %v558_v27 = vpop.f32.mrb[0].mxu1 }
 0x232   :  { %v559_v29 = vpop.f32.mrb[1].mxu1 }
 0x233   :  { %v560_v30 = vadd.f32 %v559_v29, %v558_v27 }
 0x235   :  { %v420_v31 = vadd.f32 %v560_v30, %v524_v28 }
 0x237   :  { %v423_v32 = vmax.f32 %v420_v31, 0.0 }
 0x239   :  { %611 = vmatmul.mubr.f32.vlgmr.msra.gmra.mrb[2].mxu1 %v423_v32 }
 0x30c   :  { %v513_v34 = vpop.f32.mrb[2].mxu1 }
 0x30d   :  { %v514_v35 = vadd.f32 %v525_v33, %v513_v34  ;;  %v612_v36 = vpop.f32.mrb[3].mxu1 }
 0x30f   :  { %v517_v37 = vmax.f32 %v514_v35, 0.0 }
 0x311   :  { %519 = vst.msk [vmem:[%s1406_s7] sm:$0xff] %vm518_vm1, %v517_v37 }

</bundles_post_ra>
